<compile_context>
chip_gen: v7x
topology: tpu7x:2x2x1
jax: 0.10.0
libtpu: 0.0.40
codegen_flags: <defaults>
</compile_context>

<pallas_src>
import functools

import jax
import jax.numpy as jnp
from jax.experimental import pallas as pl
from jax.experimental.pallas import tpu as pltpu

LN_EPS = 1e-5      # PyTorch nn.LayerNorm default
LANE = 128
ROW_ALIGN = 16     # bf16 LHS packs 16 rows per sublane group


def _round_up(x, m):
    return ((x + m - 1) // m) * m


# ----------------------------------------------------------------------------------
# Kernel
# ----------------------------------------------------------------------------------
def _make_mlp_kernel(num_hidden, ln_inv_counts):
    """Fused MLP kernel. Ref order: x, (w,b,gamma,beta) per hidden layer, wo, bo, out.

    ln_inv_counts[i] = 1 / real_hidden_size_i. Padded feature lanes are exactly zero
    (zero-padded weight cols / bias / gamma / beta), so LN sums over all lanes equal
    sums over real lanes.
    """
    def kernel(*refs):
        x_ref = refs[0]
        out_ref = refs[-1]
        h = x_ref[...]
        p = 1
        for li in range(num_hidden):
            w_ref, b_ref, g_ref, be_ref = refs[p:p + 4]
            p += 4
            # Linear on the MXU (bf16 or f32 operands, f32 accumulation) + f32 bias.
            h = jnp.dot(h.astype(w_ref.dtype), w_ref[...],
                        preferred_element_type=jnp.float32) + b_ref[...]
            # One-pass LayerNorm stats over the real feature count (f32 accumulation;
            # max(.,0) guards the E[h^2]-mean^2 cancellation; padded lanes are 0).
            inv_n = ln_inv_counts[li]
            s1 = jnp.sum(h, axis=-1, keepdims=True)
            s2 = jnp.sum(h * h, axis=-1, keepdims=True)
            mean = s1 * inv_n
            var = jnp.maximum(s2 * inv_n - mean * mean, 0.0)
            h = (h - mean) * jax.lax.rsqrt(var + LN_EPS) * g_ref[...] + be_ref[...]
            # ReLU (padded lanes: gamma=beta=0 -> stay exactly 0).
            h = jnp.maximum(h, 0.0)
        wo_ref, bo_ref = refs[p], refs[p + 1]
        out_ref[...] = (jnp.dot(h.astype(wo_ref.dtype), wo_ref[...],
                                preferred_element_type=jnp.float32)
                        + bo_ref[...]).astype(out_ref.dtype)
    return kernel


# ----------------------------------------------------------------------------------
# One-time parameter preprocessing (hoisted out of the per-call path)
# ----------------------------------------------------------------------------------
def prepare_params(params, *, matmul_dtype=jnp.bfloat16):
    """Pad hidden/output feature dims to multiples of 128 and cast weights to the
    matmul operand dtype.  Call ONCE and reuse across forward calls."""
    num_hidden = sum(1 for k in params if k.startswith("w") and k != "wo")
    in_features = params["w1"].shape[0]
    hidden_real = [params[f"w{i}"].shape[1] for i in range(1, num_hidden + 1)]
    out_real = params["wo"].shape[1]

    padded = []
    prev_real, prev_pad = in_features, in_features   # input K dim left as-is
    for i, hreal in enumerate(hidden_real, start=1):
        hpad = _round_up(hreal, LANE)
        w = jnp.pad(params[f"w{i}"], ((0, prev_pad - prev_real), (0, hpad - hreal)))
        b = jnp.pad(params[f"b{i}"], ((0, 0), (0, hpad - hreal)))
        g = jnp.pad(params[f"g{i}"], ((0, 0), (0, hpad - hreal)))   # zero-pad -> lanes stay 0
        be = jnp.pad(params[f"be{i}"], ((0, 0), (0, hpad - hreal)))
        padded += [w.astype(matmul_dtype), b, g, be]
        prev_real, prev_pad = hreal, hpad
    out_pad = _round_up(out_real, LANE)
    wo = jnp.pad(params["wo"], ((0, prev_pad - prev_real), (0, out_pad - out_real)))
    bo = jnp.pad(params["bo"], ((0, 0), (0, out_pad - out_real)))
    padded += [wo.astype(matmul_dtype), bo]
    padded = [jax.block_until_ready(p) for p in padded]   # materialize once

    meta = dict(
        num_hidden=num_hidden,
        in_features=in_features,
        hidden_real=tuple(hidden_real),
        out_real=out_real,
        out_pad=out_pad,
        matmul_dtype=jnp.dtype(matmul_dtype),
        max_feat=max([out_pad, in_features] + [_round_up(h, LANE) for h in hidden_real]),
        param_bytes=sum(int(p.size) * p.dtype.itemsize for p in padded),
    )
    return padded, meta


# ----------------------------------------------------------------------------------
# Chip / tiling heuristics (generation aware)
# ----------------------------------------------------------------------------------
@functools.lru_cache(maxsize=1)
def _chip_info():
    vmem_cap = 64 << 20   # conservative fallback (v7x per-TC size)
    num_tc = 1
    try:
        vmem_cap = int(pltpu.get_tpu_info().vmem_capacity_bytes)
    except Exception:
        pass
    try:
        kind = jax.devices()[0].device_kind.lower()
        if "v7" in kind or "7x" in kind:
            num_tc = 2    # v7x: 2 TensorCores per chip
    except Exception:
        pass
    return vmem_cap, num_tc


def _choose_batch_tile(B, meta, x_bytes, out_bytes, tile_b_target):
    vmem_cap, num_tc = _chip_info()
    b_align = _round_up(B, ROW_ALIGN)
    # Per-row VMEM footprint: double-buffered x/out streams + ~6 f32 activation temps
    # at the widest feature dim.  Params counted double-buffered (conservative).
    per_row = (2 * meta["in_features"] * x_bytes
               + 2 * meta["out_pad"] * out_bytes
               + 6 * meta["max_feat"] * 4)
    fixed = 2 * meta["param_bytes"]
    budget = max(vmem_cap - (16 << 20), 8 << 20)          # leave ~16 MiB headroom
    tb_budget = max((budget - fixed) // per_row, ROW_ALIGN)
    cap = int(min(tile_b_target, tb_budget))
    cap = (cap // LANE) * LANE if cap >= LANE else max((cap // ROW_ALIGN) * ROW_ALIGN,
                                                       ROW_ALIGN)

    if num_tc >= 2 and b_align >= 2 * LANE and cap >= LANE:
        # Dual-TC chip and each core gets a substantial (>=128 row) tile: split.
        tb = min(_round_up(b_align // 2, ROW_ALIGN), cap)
    elif b_align <= cap:
        tb = b_align                                       # single grid step
    else:
        tb = cap                                           # budget-capped streaming tile
    bp = _round_up(b_align, tb)

    vmem_est = tb * per_row + fixed + (4 << 20)
    vmem_limit = None
    if vmem_est > (16 << 20):   # may exceed the smallest default scoped VMEM limit
        vmem_limit = int(min(max(vmem_est, 32 << 20),
                             max(vmem_cap - (8 << 20), 32 << 20)))
    return tb, bp, vmem_limit


# ----------------------------------------------------------------------------------
# pallas_call wrapper
# ----------------------------------------------------------------------------------
_SINGLE_BUFFER_PARAMS_OK = None   # lazily probed support for pl.Buffered(1) on params


def _build_and_call(xp, padded, meta, tb, grid, vmem_limit, single_buffer_params,
                    out_dtype):
    in_features = meta["in_features"]
    out_pad = meta["out_pad"]

    def const_spec(arr):
        if single_buffer_params:
            # Params never change across the grid; single-buffer to halve their VMEM.
            return pl.BlockSpec(arr.shape, lambda i: (0, 0),
                                pipeline_mode=pl.Buffered(1))
        return pl.BlockSpec(arr.shape, lambda i: (0, 0))

    in_specs = [pl.BlockSpec((tb, in_features), lambda i: (i, 0))]
    in_specs += [const_spec(p) for p in padded]
    out_specs = pl.BlockSpec((tb, out_pad), lambda i: (i, 0))

    kernel = _make_mlp_kernel(meta["num_hidden"],
                              tuple(1.0 / float(n) for n in meta["hidden_real"]))

    return pl.pallas_call(
        kernel,
        out_shape=jax.ShapeDtypeStruct((xp.shape[0], out_pad), out_dtype),
        grid_spec=pltpu.PrefetchScalarGridSpec(
            num_scalar_prefetch=0,
            grid=(grid,),
            in_specs=in_specs,
            out_specs=out_specs,
        ),
        compiler_params=pltpu.CompilerParams(
            dimension_semantics=("parallel",),
            vmem_limit_bytes=vmem_limit),
    )(xp, *padded)


def beampredict_fully_nn(x, prepared, *, tile_b=1024, out_dtype=jnp.float32,
                         return_padded=False):
    """Fused MLP forward.  `prepared` = prepare_params(params, ...) (computed once).

    x: [B, input_size] float32.  Returns [B, output_size] in out_dtype (or the padded
    [Bp, out_pad] slab when return_padded=True, letting the consumer slice lazily).
    """
    global _SINGLE_BUFFER_PARAMS_OK
    padded, meta = prepared
    B = x.shape[0]
    mm_dtype = meta["matmul_dtype"]
    x_bytes = jnp.dtype(mm_dtype).itemsize
    out_bytes = jnp.dtype(out_dtype).itemsize

    tb, bp, vmem_limit = _choose_batch_tile(B, meta, x_bytes, out_bytes, tile_b)
    grid = bp // tb

    xp = x
    if bp != B:
        xp = jnp.pad(xp, ((0, bp - B), (0, 0)))
    if xp.dtype != mm_dtype:
        xp = xp.astype(mm_dtype)   # bf16 path: halves the streamed x HBM->VMEM bytes

    # Only bother single-buffering params when they are big enough to buy real VMEM.
    want_single = meta["param_bytes"] >= (1 << 20)
    if want_single and _SINGLE_BUFFER_PARAMS_OK is None:
        try:
            out = _build_and_call(xp, padded, meta, tb, grid, vmem_limit, True, out_dtype)
            _SINGLE_BUFFER_PARAMS_OK = True
        except Exception:
            _SINGLE_BUFFER_PARAMS_OK = False
            out = _build_and_call(xp, padded, meta, tb, grid, vmem_limit, False, out_dtype)
    else:
        use_single = bool(want_single and _SINGLE_BUFFER_PARAMS_OK)
        out = _build_and_call(xp, padded, meta, tb, grid, vmem_limit, use_single, out_dtype)

    if return_padded:
        return out
    return out[:B, :meta["out_real"]]


# ----------------------------------------------------------------------------------
# Synthetic init + pure-JAX reference
# ----------------------------------------------------------------------------------
def init_params(key, input_size, hidden_sizes, output_size):
    """Deterministic synthetic parameter init (matches the module's shapes)."""
    ks = jax.random.split(key, 2 * (len(hidden_sizes) + 1))
    params = {}
    prev = input_size
    for li, size in enumerate(hidden_sizes, start=1):
        kw, kb = ks[2 * (li - 1)], ks[2 * (li - 1) + 1]
        # nn.Linear stores weight as [out, in]; pre-transpose to [in, out].
        w = jax.random.normal(kw, (size, prev), jnp.float32) * 0.1
        b = jax.random.normal(kb, (size,), jnp.float32) * 0.01
        params[f"w{li}"] = w.T
        params[f"b{li}"] = b.reshape(1, size)
        # LayerNorm affine params (PyTorch init: weight=1, bias=0).
        params[f"g{li}"] = jnp.ones((1, size), jnp.float32)
        params[f"be{li}"] = jnp.zeros((1, size), jnp.float32)
        prev = size
    kwo, kbo = ks[-2], ks[-1]
    wo = jax.random.normal(kwo, (output_size, prev), jnp.float32) * 0.1
    bo = jax.random.normal(kbo, (output_size,), jnp.float32) * 0.01
    params["wo"] = wo.T
    params["bo"] = bo.reshape(1, output_size)
    return params


def reference_forward(x, params):
    """Pure-JAX reference of the PyTorch forward pass (LN norm, dropout p=0)."""
    num_hidden = sum(1 for k in params if k.startswith("w") and k != "wo")
    h = x
    for li in range(1, num_hidden + 1):
        h = h @ params[f"w{li}"] + params[f"b{li}"]
        mean = jnp.mean(h, axis=-1, keepdims=True)
        var = jnp.mean((h - mean) ** 2, axis=-1, keepdims=True)
        h = (h - mean) / jnp.sqrt(var + LN_EPS) * params[f"g{li}"] + params[f"be{li}"]
        h = jnp.maximum(h, 0.0)
    return h @ params["wo"] + params["bo"]


if __name__ == "__main__":
    # TODO(synk): only the 'LN' norm branch (the chosen config) is implemented; the
    # GN / BN / Identity branches and dropout_prob > 0 training path are not translated.
    input_size = 32
    hidden_sizes = [64, 128]
    output_size = 16
    batch = 64

    key = jax.random.PRNGKey(0)
    kx, kp = jax.random.split(key)
    x = jax.random.normal(kx, (batch, input_size), jnp.float32)
    params = init_params(kp, input_size, hidden_sizes, output_size)

    ref = reference_forward(x, params)

    # Exact-semantics check: f32 matmul operands.
    prepared_f32 = prepare_params(params, matmul_dtype=jnp.float32)
    out_f32 = jax.block_until_ready(beampredict_fully_nn(x, prepared_f32))
    assert out_f32.shape == (batch, output_size)
    assert jnp.allclose(out_f32, ref, atol=1e-4, rtol=1e-4), "f32 path mismatch vs reference"

    # Default fast path: bf16 matmul operands, f32 accumulation / LN / ReLU.
    prepared_bf16 = prepare_params(params, matmul_dtype=jnp.bfloat16)
    out = jax.block_until_ready(beampredict_fully_nn(x, prepared_bf16))
    assert out.shape == (batch, output_size)
    assert jnp.allclose(out, ref, atol=0.15, rtol=0.15), "bf16 path mismatch vs reference"

    print("KERNEL_OK")
</pallas_src>

<mosaic_0001>
module attributes {stable_mosaic.version = 11 : i64} {
  func.func @kernel(%arg0: i32, %arg1: memref<64x32xf32, #tpu.memory_space<vmem>>, %arg2: memref<32x128xf32, #tpu.memory_space<vmem>>, %arg3: memref<1x128xf32, #tpu.memory_space<vmem>>, %arg4: memref<1x128xf32, #tpu.memory_space<vmem>>, %arg5: memref<1x128xf32, #tpu.memory_space<vmem>>, %arg6: memref<128x128xf32, #tpu.memory_space<vmem>>, %arg7: memref<1x128xf32, #tpu.memory_space<vmem>>, %arg8: memref<1x128xf32, #tpu.memory_space<vmem>>, %arg9: memref<1x128xf32, #tpu.memory_space<vmem>>, %arg10: memref<128x128xf32, #tpu.memory_space<vmem>>, %arg11: memref<1x128xf32, #tpu.memory_space<vmem>>, %arg12: memref<64x128xf32, #tpu.memory_space<vmem>>) attributes {dimension_semantics = [#tpu.dimension_semantics<parallel>], iteration_bounds = array<i64: 1>, scalar_prefetch = 0 : i64, scratch_operands = 0 : i64, tpu.core_type = #tpu.core_type<tc>, window_params = [{transform_indices = @transform_0, window_bounds = array<i64: 64, 32>}, {pipeline_mode = #tpu.pipeline_mode<synchronous>, transform_indices = @transform_1, window_bounds = array<i64: 32, 128>}, {pipeline_mode = #tpu.pipeline_mode<synchronous>, transform_indices = @transform_2, window_bounds = array<i64: 1, 128>}, {pipeline_mode = #tpu.pipeline_mode<synchronous>, transform_indices = @transform_3, window_bounds = array<i64: 1, 128>}, {pipeline_mode = #tpu.pipeline_mode<synchronous>, transform_indices = @transform_4, window_bounds = array<i64: 1, 128>}, {pipeline_mode = #tpu.pipeline_mode<synchronous>, transform_indices = @transform_5, window_bounds = array<i64: 128, 128>}, {pipeline_mode = #tpu.pipeline_mode<synchronous>, transform_indices = @transform_6, window_bounds = array<i64: 1, 128>}, {pipeline_mode = #tpu.pipeline_mode<synchronous>, transform_indices = @transform_7, window_bounds = array<i64: 1, 128>}, {pipeline_mode = #tpu.pipeline_mode<synchronous>, transform_indices = @transform_8, window_bounds = array<i64: 1, 128>}, {pipeline_mode = #tpu.pipeline_mode<synchronous>, transform_indices = @transform_9, window_bounds = array<i64: 128, 128>}, {pipeline_mode = #tpu.pipeline_mode<synchronous>, transform_indices = @transform_10, window_bounds = array<i64: 1, 128>}, {transform_indices = @transform_11, window_bounds = array<i64: 64, 128>}]} {
    %c0 = arith.constant 0 : index
    %c0_0 = arith.constant 0 : index
    %0 = vector.load %arg1[%c0, %c0_0] : memref<64x32xf32, #tpu.memory_space<vmem>>, vector<64x32xf32>
    %c0_1 = arith.constant 0 : index
    %c0_2 = arith.constant 0 : index
    %1 = vector.load %arg2[%c0_1, %c0_2] : memref<32x128xf32, #tpu.memory_space<vmem>>, vector<32x128xf32>
    %cst = arith.constant dense<0.000000e+00> : vector<64x128xf32>
    %2 = tpu.matmul %0, %1, %cst {dimension_numbers = #tpu.dot_dimension_numbers<[1], [0], [0], [1], [0, 0, 1, 1], [], []>} : vector<64x32xf32>, vector<32x128xf32>, vector<64x128xf32> -> vector<64x128xf32>
    %c0_3 = arith.constant 0 : index
    %c0_4 = arith.constant 0 : index
    %3 = vector.load %arg3[%c0_3, %c0_4] : memref<1x128xf32, #tpu.memory_space<vmem>>, vector<1x128xf32>
    %4 = vector.broadcast %3 : vector<1x128xf32> to vector<64x128xf32>
    %5 = arith.addf %2, %4 : vector<64x128xf32>
    %cst_5 = arith.constant dense<0.000000e+00> : vector<64xf32>
    %6 = vector.multi_reduction <add>, %5, %cst_5 [1] : vector<64x128xf32> to vector<64xf32>
    %7 = vector.shape_cast %6 : vector<64xf32> to vector<64x1xf32>
    %8 = arith.mulf %5, %5 : vector<64x128xf32>
    %cst_6 = arith.constant dense<0.000000e+00> : vector<64xf32>
    %9 = vector.multi_reduction <add>, %8, %cst_6 [1] : vector<64x128xf32> to vector<64xf32>
    %10 = vector.shape_cast %9 : vector<64xf32> to vector<64x1xf32>
    %cst_7 = arith.constant 1.562500e-02 : f32
    %11 = vector.broadcast %cst_7 : f32 to vector<64x1xf32>
    %12 = arith.mulf %7, %11 : vector<64x1xf32>
    %cst_8 = arith.constant 1.562500e-02 : f32
    %13 = vector.broadcast %cst_8 : f32 to vector<64x1xf32>
    %14 = arith.mulf %10, %13 : vector<64x1xf32>
    %15 = arith.mulf %12, %12 : vector<64x1xf32>
    %16 = arith.subf %14, %15 : vector<64x1xf32>
    %cst_9 = arith.constant 0.000000e+00 : f32
    %17 = vector.broadcast %cst_9 : f32 to vector<64x1xf32>
    %18 = arith.maximumf %16, %17 : vector<64x1xf32>
    %19 = vector.broadcast %12 : vector<64x1xf32> to vector<64x128xf32>
    %20 = arith.subf %5, %19 : vector<64x128xf32>
    %cst_10 = arith.constant 9.99999974E-6 : f32
    %21 = vector.broadcast %cst_10 : f32 to vector<64x1xf32>
    %22 = arith.addf %18, %21 : vector<64x1xf32>
    %23 = math.rsqrt %22 : vector<64x1xf32>
    %24 = vector.broadcast %23 : vector<64x1xf32> to vector<64x128xf32>
    %25 = arith.mulf %20, %24 : vector<64x128xf32>
    %c0_11 = arith.constant 0 : index
    %c0_12 = arith.constant 0 : index
    %26 = vector.load %arg4[%c0_11, %c0_12] : memref<1x128xf32, #tpu.memory_space<vmem>>, vector<1x128xf32>
    %27 = vector.broadcast %26 : vector<1x128xf32> to vector<64x128xf32>
    %28 = arith.mulf %25, %27 : vector<64x128xf32>
    %c0_13 = arith.constant 0 : index
    %c0_14 = arith.constant 0 : index
    %29 = vector.load %arg5[%c0_13, %c0_14] : memref<1x128xf32, #tpu.memory_space<vmem>>, vector<1x128xf32>
    %30 = vector.broadcast %29 : vector<1x128xf32> to vector<64x128xf32>
    %31 = arith.addf %28, %30 : vector<64x128xf32>
    %cst_15 = arith.constant 0.000000e+00 : f32
    %32 = vector.broadcast %cst_15 : f32 to vector<64x128xf32>
    %33 = arith.maximumf %31, %32 : vector<64x128xf32>
    %c0_16 = arith.constant 0 : index
    %c0_17 = arith.constant 0 : index
    %34 = vector.load %arg6[%c0_16, %c0_17] : memref<128x128xf32, #tpu.memory_space<vmem>>, vector<128x128xf32>
    %cst_18 = arith.constant dense<0.000000e+00> : vector<64x128xf32>
    %35 = tpu.matmul %33, %34, %cst_18 {dimension_numbers = #tpu.dot_dimension_numbers<[1], [0], [0], [1], [0, 0, 1, 1], [], []>} : vector<64x128xf32>, vector<128x128xf32>, vector<64x128xf32> -> vector<64x128xf32>
    %c0_19 = arith.constant 0 : index
    %c0_20 = arith.constant 0 : index
    %36 = vector.load %arg7[%c0_19, %c0_20] : memref<1x128xf32, #tpu.memory_space<vmem>>, vector<1x128xf32>
    %37 = vector.broadcast %36 : vector<1x128xf32> to vector<64x128xf32>
    %38 = arith.addf %35, %37 : vector<64x128xf32>
    %cst_21 = arith.constant dense<0.000000e+00> : vector<64xf32>
    %39 = vector.multi_reduction <add>, %38, %cst_21 [1] : vector<64x128xf32> to vector<64xf32>
    %40 = vector.shape_cast %39 : vector<64xf32> to vector<64x1xf32>
    %41 = arith.mulf %38, %38 : vector<64x128xf32>
    %cst_22 = arith.constant dense<0.000000e+00> : vector<64xf32>
    %42 = vector.multi_reduction <add>, %41, %cst_22 [1] : vector<64x128xf32> to vector<64xf32>
    %43 = vector.shape_cast %42 : vector<64xf32> to vector<64x1xf32>
    %cst_23 = arith.constant 7.812500e-03 : f32
    %44 = vector.broadcast %cst_23 : f32 to vector<64x1xf32>
    %45 = arith.mulf %40, %44 : vector<64x1xf32>
    %cst_24 = arith.constant 7.812500e-03 : f32
    %46 = vector.broadcast %cst_24 : f32 to vector<64x1xf32>
    %47 = arith.mulf %43, %46 : vector<64x1xf32>
    %48 = arith.mulf %45, %45 : vector<64x1xf32>
    %49 = arith.subf %47, %48 : vector<64x1xf32>
    %cst_25 = arith.constant 0.000000e+00 : f32
    %50 = vector.broadcast %cst_25 : f32 to vector<64x1xf32>
    %51 = arith.maximumf %49, %50 : vector<64x1xf32>
    %52 = vector.broadcast %45 : vector<64x1xf32> to vector<64x128xf32>
    %53 = arith.subf %38, %52 : vector<64x128xf32>
    %cst_26 = arith.constant 9.99999974E-6 : f32
    %54 = vector.broadcast %cst_26 : f32 to vector<64x1xf32>
    %55 = arith.addf %51, %54 : vector<64x1xf32>
    %56 = math.rsqrt %55 : vector<64x1xf32>
    %57 = vector.broadcast %56 : vector<64x1xf32> to vector<64x128xf32>
    %58 = arith.mulf %53, %57 : vector<64x128xf32>
    %c0_27 = arith.constant 0 : index
    %c0_28 = arith.constant 0 : index
    %59 = vector.load %arg8[%c0_27, %c0_28] : memref<1x128xf32, #tpu.memory_space<vmem>>, vector<1x128xf32>
    %60 = vector.broadcast %59 : vector<1x128xf32> to vector<64x128xf32>
    %61 = arith.mulf %58, %60 : vector<64x128xf32>
    %c0_29 = arith.constant 0 : index
    %c0_30 = arith.constant 0 : index
    %62 = vector.load %arg9[%c0_29, %c0_30] : memref<1x128xf32, #tpu.memory_space<vmem>>, vector<1x128xf32>
    %63 = vector.broadcast %62 : vector<1x128xf32> to vector<64x128xf32>
    %64 = arith.addf %61, %63 : vector<64x128xf32>
    %cst_31 = arith.constant 0.000000e+00 : f32
    %65 = vector.broadcast %cst_31 : f32 to vector<64x128xf32>
    %66 = arith.maximumf %64, %65 : vector<64x128xf32>
    %c0_32 = arith.constant 0 : index
    %c0_33 = arith.constant 0 : index
    %67 = vector.load %arg10[%c0_32, %c0_33] : memref<128x128xf32, #tpu.memory_space<vmem>>, vector<128x128xf32>
    %cst_34 = arith.constant dense<0.000000e+00> : vector<64x128xf32>
    %68 = tpu.matmul %66, %67, %cst_34 {dimension_numbers = #tpu.dot_dimension_numbers<[1], [0], [0], [1], [0, 0, 1, 1], [], []>} : vector<64x128xf32>, vector<128x128xf32>, vector<64x128xf32> -> vector<64x128xf32>
    %c0_35 = arith.constant 0 : index
    %c0_36 = arith.constant 0 : index
    %69 = vector.load %arg11[%c0_35, %c0_36] : memref<1x128xf32, #tpu.memory_space<vmem>>, vector<1x128xf32>
    %70 = vector.broadcast %69 : vector<1x128xf32> to vector<64x128xf32>
    %71 = arith.addf %68, %70 : vector<64x128xf32>
    %c0_37 = arith.constant 0 : index
    %c0_38 = arith.constant 0 : index
    %72 = vector.load %arg12[%c0_37, %c0_38] : memref<64x128xf32, #tpu.memory_space<vmem>>, vector<64x128xf32>
    tpu.vector_store %arg12[%c0_37, %c0_38], %71 {strides = array<i32>} : memref<64x128xf32, #tpu.memory_space<vmem>>, vector<64x128xf32>,
    return
  }
  func.func @transform_0(%arg0: i32) -> (i32, i32) {
    %c0_i32 = arith.constant 0 : i32
    %c0_i32_0 = arith.constant 0 : i32
    return %arg0, %c0_i32 : i32, i32
  }
  func.func @transform_1(%arg0: i32) -> (i32, i32) {
    %c0_i32 = arith.constant 0 : i32
    %c0_i32_0 = arith.constant 0 : i32
    %c0_i32_1 = arith.constant 0 : i32
    return %c0_i32, %c0_i32_0 : i32, i32
  }
  func.func @transform_2(%arg0: i32) -> (i32, i32) {
    %c0_i32 = arith.constant 0 : i32
    %c0_i32_0 = arith.constant 0 : i32
    %c0_i32_1 = arith.constant 0 : i32
    return %c0_i32, %c0_i32_0 : i32, i32
  }
  func.func @transform_3(%arg0: i32) -> (i32, i32) {
    %c0_i32 = arith.constant 0 : i32
    %c0_i32_0 = arith.constant 0 : i32
    %c0_i32_1 = arith.constant 0 : i32
    return %c0_i32, %c0_i32_0 : i32, i32
  }
  func.func @transform_4(%arg0: i32) -> (i32, i32) {
    %c0_i32 = arith.constant 0 : i32
    %c0_i32_0 = arith.constant 0 : i32
    %c0_i32_1 = arith.constant 0 : i32
    return %c0_i32, %c0_i32_0 : i32, i32
  }
  func.func @transform_5(%arg0: i32) -> (i32, i32) {
    %c0_i32 = arith.constant 0 : i32
    %c0_i32_0 = arith.constant 0 : i32
    %c0_i32_1 = arith.constant 0 : i32
    return %c0_i32, %c0_i32_0 : i32, i32
  }
  func.func @transform_6(%arg0: i32) -> (i32, i32) {
    %c0_i32 = arith.constant 0 : i32
    %c0_i32_0 = arith.constant 0 : i32
    %c0_i32_1 = arith.constant 0 : i32
    return %c0_i32, %c0_i32_0 : i32, i32
  }
  func.func @transform_7(%arg0: i32) -> (i32, i32) {
    %c0_i32 = arith.constant 0 : i32
    %c0_i32_0 = arith.constant 0 : i32
    %c0_i32_1 = arith.constant 0 : i32
    return %c0_i32, %c0_i32_0 : i32, i32
  }
  func.func @transform_8(%arg0: i32) -> (i32, i32) {
    %c0_i32 = arith.constant 0 : i32
    %c0_i32_0 = arith.constant 0 : i32
    %c0_i32_1 = arith.constant 0 : i32
    return %c0_i32, %c0_i32_0 : i32, i32
  }
  func.func @transform_9(%arg0: i32) -> (i32, i32) {
    %c0_i32 = arith.constant 0 : i32
    %c0_i32_0 = arith.constant 0 : i32
    %c0_i32_1 = arith.constant 0 : i32
    return %c0_i32, %c0_i32_0 : i32, i32
  }
  func.func @transform_10(%arg0: i32) -> (i32, i32) {
    %c0_i32 = arith.constant 0 : i32
    %c0_i32_0 = arith.constant 0 : i32
    %c0_i32_1 = arith.constant 0 : i32
    return %c0_i32, %c0_i32_0 : i32, i32
  }
  func.func @transform_11(%arg0: i32) -> (i32, i32) {
    %c0_i32 = arith.constant 0 : i32
    %c0_i32_0 = arith.constant 0 : i32
    return %arg0, %c0_i32 : i32, i32
  }
}

</mosaic_0001>

<bundles_post_ra>
// kernel: tpu_custom_call.1
= control target key start
LH: loop header
LB: loop body
LE: loop exit
PB: predicated region body
PF: predicated region fallthrough
CT: control target
= control target key end

     0   :  { %16 = vsyncpa [#allocation3], 0  ;;  %s1743_s0 = inlined_call_operand.vmem [shape: f32[64,32], index: 0, kind: input, shape index: {}]   ;;  %s1744_s1 = inlined_call_operand.hbm [shape: f32[32,128], index: 1, kind: input, shape index: {}]   ;;  %s1745_s2 = inlined_call_operand.vmem [shape: f32[1,128], index: 2, kind: input, shape index: {}]   ;;  %s1746_s3 = inlined_call_operand.vmem [shape: f32[1,128], index: 3, kind: input, shape index: {}]   ;;  %s1747_s4 = inlined_call_operand.hbm [shape: f32[1,128], index: 4, kind: input, shape index: {}]   ;;  %s1748_s5 = inlined_call_operand.hbm [shape: f32[128,128], index: 5, kind: input, shape index: {}]   ;;  %s1749_s6 = inlined_call_operand.hbm [shape: f32[1,128], index: 6, kind: input, shape index: {}]   ;;  %s1750_s7 = inlined_call_operand.hbm [shape: f32[1,128], index: 7, kind: input, shape index: {}]   ;;  %s1751_s8 = inlined_call_operand.hbm [shape: f32[1,128], index: 8, kind: input, shape index: {}]   ;;  %s1752_s9 = inlined_call_operand.vmem [shape: f32[128,128], index: 9, kind: input, shape index: {}]   ;;  %s1753_s10 = inlined_call_operand.vmem [shape: f32[1,128], index: 10, kind: input, shape index: {}]   ;;  %s1754_s11 = inlined_call_operand.hbm [shape: f32[64,128], index: 11, kind: output, shape index: {}]  }
   0x1   :  { %17 = vsyncpa [#allocation6], 0 }
   0x2   :  { %18 = vsyncpa [#allocation9], 0 }
   0x3   :  { %19 = vsyncpa [#allocation12], 0 }
   0x4   :  { %20 = vsyncpa [#allocation4], 0  ;;  %s1306_s17 = smov [#allocation5]   ;;  %s1307_s19 = smov [#allocation8]  }
   0x5   :  { %s45_s18 = sshll.u32 %s1306_s17, 4  ;;  %s67_s20 = sshll.u32 %s1307_s19, 4  ;;  %s46_s18 = int_to_ptr.vmem [resolvable:$true] %s45_s18  ;;  %s68_s20 = int_to_ptr.vmem [resolvable:$true] %s67_s20 }
   0x6   :  { %s1142_s23 = scalar_lea.hbm %s1747_s4, 16 }
   0x7   :  { %p1143_p0 = scmp.ne.s32.totalorder %s1747_s4, %s1142_s23  ;;  %p1146_p1 = scmp.lt.u32.totalorder %s1142_s23, %s1747_s4 }
   0x9   :  { %p1148_p2 = pnand %p1146_p1, %p1143_p0 }
   0xb   :  { %1151 = shalt.err (!%p1148_p2)
}
   0xc   :  { %s1152_s28 = scalar_lea.vmem %s46_s18, 16  ;;  %s1156_s29 = scalar_lea.vmem %s46_s18, 32 }
   0xd   :  { %p1153_p3 = scmp.ne.s32.totalorder %s46_s18, %s1152_s28  ;;  %p1157_p4 = scmp.lt.s32.totalorder %s46_s18, %s46_s18 }
   0xe   :  { %p1158_p5 = scmp.lt.s32.totalorder %s1156_s29, %s1152_s28 }
  0x10   :  { %p1159_p6 = por %p1158_p5, %p1157_p4 }
  0x12   :  { %p1160_p7 = pnand %p1159_p6, %p1153_p3 }
  0x14   :  { %1163 = shalt.err (!%p1160_p7)
}
  0x15   :  { %48 = dma.hbm_to_vmem [thread:$0]  %s1747_s4, 16, %s46_s18, [#allocation6]  }
  0x16   :  { %s1164_s15 = scalar_lea.hbm %s1749_s6, 16 }
  0x17   :  { %p1165_p8 = scmp.ne.s32.totalorder %s1749_s6, %s1164_s15  ;;  %p1168_p9 = scmp.lt.u32.totalorder %s1164_s15, %s1749_s6 }
  0x19   :  { %p1170_p10 = pnand %p1168_p9, %p1165_p8 }
  0x1b   :  { %1173 = shalt.err (!%p1170_p10)
}
  0x1c   :  { %s1174_s22 = scalar_lea.vmem %s68_s20, 16  ;;  %s1178_s23 = scalar_lea.vmem %s68_s20, 32 }
  0x1d   :  { %p1175_p11 = scmp.ne.s32.totalorder %s68_s20, %s1174_s22  ;;  %p1179_p12 = scmp.lt.s32.totalorder %s68_s20, %s68_s20 }
  0x1e   :  { %p1180_p13 = scmp.lt.s32.totalorder %s1178_s23, %s1174_s22 }
  0x20   :  { %p1181_p0 = por %p1180_p13, %p1179_p12 }
  0x22   :  { %p1182_p1 = pnand %p1181_p0, %p1175_p11 }
  0x24   :  { %1185 = shalt.err (!%p1182_p1)
}
  0x25   :  { %70 = dma.hbm_to_vmem [thread:$0]  %s1749_s6, 16, %s68_s20, [#allocation9]  }
  0x26   :  { %s1308_s24 = smov [#allocation2]   ;;  %s1186_s28 = scalar_lea.hbm %s1744_s1, 512 }
  0x27   :  { %s28_s25 = sshll.u32 %s1308_s24, 4  ;;  %p1187_p2 = scmp.ne.s32.totalorder %s1744_s1, %s1186_s28  ;;  %s29_s25 = int_to_ptr.vmem [resolvable:$true] %s28_s25 }
  0x28   :  { %p1190_p3 = scmp.lt.u32.totalorder %s1186_s28, %s1744_s1 }
  0x2a   :  { %p1192_p4 = pnand %p1190_p3, %p1187_p2 }
  0x2c   :  { %1195 = shalt.err (!%p1192_p4)
}
  0x2d   :  { %s1196_s14 = scalar_lea.vmem %s29_s25, 512  ;;  %p1201_p6 = scmp.lt.s32.totalorder %s29_s25, %s29_s25 }
  0x2e   :  { %p1197_p5 = scmp.ne.s32.totalorder %s29_s25, %s1196_s14  ;;  %p1202_p7 = scmp.lt.s32.totalorder %s1196_s14, %s1196_s14 }
  0x30   :  { %p1203_p8 = por %p1202_p7, %p1201_p6 }
  0x32   :  { %p1204_p9 = pnand %p1203_p8, %p1197_p5 }
  0x34   :  { %1207 = shalt.err (!%p1204_p9)
}
  0x35   :  { %s1309_s6 = smov 128   ;;  %s1310_s20 = smov 8  }
  0x36   :  { %34 = dma.hbm_to_vmem [thread:$0]  %s1744_s1, 512, %s29_s25, [#allocation3], %s1309_s6, %s1309_s6, %s1310_s20  }
  0x37   :  { %s1311_s17 = smov [#allocation7]   ;;  %s1312_s21 = smov [#allocation10]  }
  0x38   :  { %s54_s19 = sshll.u32 %s1311_s17, 4  ;;  %s77_s22 = sshll.u32 %s1312_s21, 4  ;;  %s55_s19 = int_to_ptr.vmem [resolvable:$true] %s54_s19  ;;  %s78_s22 = int_to_ptr.vmem [resolvable:$true] %s77_s22 }
  0x39   :  { %s1208_s18 = scalar_lea.hbm %s1748_s5, 2048 }
  0x3a   :  { %p1209_p10 = scmp.ne.s32.totalorder %s1748_s5, %s1208_s18  ;;  %p1212_p11 = scmp.lt.u32.totalorder %s1208_s18, %s1748_s5 }
  0x3c   :  { %p1214_p12 = pnand %p1212_p11, %p1209_p10 }
  0x3e   :  { %1217 = shalt.err (!%p1214_p12)
}
  0x3f   :  { %s1218_s1 = scalar_lea.vmem %s55_s19, 2048  ;;  %p1223_p0 = scmp.lt.s32.totalorder %s55_s19, %s55_s19 }
  0x40   :  { %p1219_p13 = scmp.ne.s32.totalorder %s55_s19, %s1218_s1  ;;  %p1224_p1 = scmp.lt.s32.totalorder %s1218_s1, %s1218_s1 }
  0x42   :  { %p1225_p2 = por %p1224_p1, %p1223_p0 }
  0x44   :  { %p1226_p3 = pnand %p1225_p2, %p1219_p13 }
  0x46   :  { %1229 = shalt.err (!%p1226_p3)
}
  0x47   :  { %60 = dma.hbm_to_vmem [thread:$0]  %s1748_s5, 2048, %s55_s19, [#allocation6], %s1309_s6, %s1309_s6, %s1310_s20  }
  0x48   :  { %s1230_s13 = scalar_lea.hbm %s1750_s7, 16 }
  0x49   :  { %p1231_p4 = scmp.ne.s32.totalorder %s1750_s7, %s1230_s13  ;;  %p1234_p5 = scmp.lt.u32.totalorder %s1230_s13, %s1750_s7 }
  0x4b   :  { %p1236_p6 = pnand %p1234_p5, %p1231_p4 }
  0x4d   :  { %1239 = shalt.err (!%p1236_p6)
}
  0x4e   :  { %s1240_s21 = scalar_lea.vmem %s78_s22, 16  ;;  %s1244_s23 = scalar_lea.vmem %s78_s22, 32 }
  0x4f   :  { %p1241_p7 = scmp.ne.s32.totalorder %s78_s22, %s1240_s21  ;;  %p1245_p8 = scmp.lt.s32.totalorder %s78_s22, %s78_s22 }
  0x50   :  { %p1246_p9 = scmp.lt.s32.totalorder %s1244_s23, %s1240_s21 }
  0x52   :  { %p1247_p10 = por %p1246_p9, %p1245_p8 }
  0x54   :  { %p1248_p11 = pnand %p1247_p10, %p1241_p7 }
  0x56   :  { %1251 = shalt.err (!%p1248_p11)
}
  0x57   :  { %80 = dma.hbm_to_vmem [thread:$0]  %s1750_s7, 16, %s78_s22, [#allocation9]  }
  0x58   :  { %s1313_s4 = smov [#allocation11]   ;;  %s1252_s27 = scalar_lea.hbm %s1751_s8, 16 }
  0x59   :  { %s87_s18 = sshll.u32 %s1313_s4, 4  ;;  %p1253_p12 = scmp.ne.s32.totalorder %s1751_s8, %s1252_s27  ;;  %s88_s18 = int_to_ptr.vmem [resolvable:$true] %s87_s18 }
  0x5a   :  { %p1256_p13 = scmp.lt.u32.totalorder %s1252_s27, %s1751_s8 }
  0x5c   :  { %p1258_p0 = pnand %p1256_p13, %p1253_p12 }
  0x5e   :  { %1261 = shalt.err (!%p1258_p0)
}
  0x5f   :  { %s1262_s30 = scalar_lea.vmem %s88_s18, 16  ;;  %s1266_s7 = scalar_lea.vmem %s88_s18, 32 }
  0x60   :  { %p1263_p1 = scmp.ne.s32.totalorder %s88_s18, %s1262_s30  ;;  %p1267_p2 = scmp.lt.s32.totalorder %s88_s18, %s88_s18 }
  0x61   :  { %p1268_p3 = scmp.lt.s32.totalorder %s1266_s7, %s1262_s30 }
  0x63   :  { %p1269_p4 = por %p1268_p3, %p1267_p2 }
  0x65   :  { %p1270_p5 = pnand %p1269_p4, %p1263_p1 }
  0x67   :  { %1273 = shalt.err (!%p1270_p5)
}
  0x68   :  { %90 = dma.hbm_to_vmem [thread:$0]  %s1751_s8, 16, %s88_s18, [#allocation12]  }
  0x69   :  { %1296 = dma.done.wait [#allocation3], 512  }
  0x6a   :  { %1297 = vsyncadd [#allocation3], 4294966784 }
  0x6b   :  { %1298 = dma.done.wait [#allocation6], 2064  }
  0x6c   :  { %1299 = vsyncadd [#allocation6], 4294965232 }
  0x6d   :  { %1300 = dma.done.wait [#allocation9], 32  }
  0x6e   :  { %1301 = vsyncadd [#allocation9], 4294967264 }
  0x6f   :  { %1302 = dma.done.wait [#allocation12], 16  }
  0x70   :  { %1303 = vsyncadd [#allocation12], 4294967280  ;;  %vm132_vm0 = vcmask 261120   ;;  %v121_v0 = vld [vmem:[#allocation2] sm:$0xff]  ;;  %v122_v1 = vld [vmem:[#allocation2 + $0x8] sm:$0xff]  ;;  %s1314_s14 = smov [#allocation13]  }
  0x71   :  { %v123_v2 = vld [vmem:[#allocation2 + $0x10] sm:$0xff]  ;;  %v1029_v3 = vpack.c.bf16 %v122_v1, %v121_v0  ;;  %v124_v4 = vld [vmem:[#allocation2 + $0x18] sm:$0xff]  ;;  %v113_v5 = vld [vmem:[%s1743_s0] sm:$0xff] }
  0x72   :  { %v1033_v6 = vpack.c.bf16 %v124_v4, %v123_v2  ;;  %929 = vmatprep.mubr.msk.f32.mxu0 %vm132_vm0, %v113_v5  ;;  %v114_v7 = vld [vmem:[%s1743_s0 + $0x8] sm:$0xff]  ;;  %v115_v8 = vld [vmem:[%s1743_s0 + $0x10] sm:$0xff]  ;;  %v116_v9 = vld [vmem:[%s1743_s0 + $0x18] sm:$0xff] }
  0x73   :  { %1030 = vmatprep.subr.bf16.mxu0 %v1029_v3  ;;  %v117_v10 = vld [vmem:[%s1743_s0 + $0x20] sm:$0xff]  ;;  %v118_v11 = vld [vmem:[%s1743_s0 + $0x28] sm:$0xff]  ;;  %v119_v12 = vld [vmem:[%s1743_s0 + $0x30] sm:$0xff] }
  0x74   :  { %1032 = vmatpush3.bf16.msra.mxu0 %v1029_v3  ;;  %v120_v13 = vld [vmem:[%s1743_s0 + $0x38] sm:$0xff]  ;;  %v846_v14 = vld [vmem:[%s1745_s2] ss:$0 sm:$0xff]  ;;  %v412_v32 = vld [vmem:[#allocation7] sm:$0xff] }
  0x75   :  { %1034 = vmatprep.subr.bf16.mxu0 %v1033_v6  ;;  %v413_v33 = vld [vmem:[#allocation7 + $0x8] sm:$0xff]  ;;  %v414_v37 = vld [vmem:[#allocation7 + $0x10] sm:$0xff]  ;;  %v415_v38 = vld [vmem:[#allocation7 + $0x18] sm:$0xff] }
  0x76   :  { %v1037_v35 = vpack.c.bf16 %v413_v33, %v412_v32  ;;  %v1041_v39 = vpack.c.bf16 %v415_v38, %v414_v37  ;;  %v416_v43 = vld [vmem:[#allocation7 + $0x20] sm:$0xff]  ;;  %v417_v44 = vld [vmem:[#allocation7 + $0x28] sm:$0xff]  ;;  %v418_v47 = vld [vmem:[#allocation7 + $0x30] sm:$0xff] }
  0x77   :  { %v1045_v45 = vpack.c.bf16 %v417_v44, %v416_v43  ;;  %v419_v48 = vld [vmem:[#allocation7 + $0x38] sm:$0xff]  ;;  %v420_v51 = vld [vmem:[#allocation7 + $0x40] sm:$0xff]  ;;  %v421_v52 = vld [vmem:[#allocation7 + $0x48] sm:$0xff] }
  0x78   :  { %1036 = vmatpush3.bf16.msra.mxu0 %v1033_v6  ;;  %1038 = vmatprep.subr.bf16.mxu1 %v1037_v35  ;;  %v1049_v49 = vpack.c.bf16 %v419_v48, %v418_v47  ;;  %v1053_v53 = vpack.c.bf16 %v421_v52, %v420_v51  ;;  %v422_v54 = vld [vmem:[#allocation7 + $0x50] sm:$0xff]  ;;  %v423_v55 = vld [vmem:[#allocation7 + $0x58] sm:$0xff]  ;;  %v424_v57 = vld [vmem:[#allocation7 + $0x60] sm:$0xff] }
  0x79   :  { %1040 = vmatpush3.bf16.msra.mxu1 %v1037_v35  ;;  %v1057_v56 = vpack.c.bf16 %v423_v55, %v422_v54  ;;  %v425_v58 = vld [vmem:[#allocation7 + $0x68] sm:$0xff]  ;;  %v426_v60 = vld [vmem:[#allocation7 + $0x70] sm:$0xff]  ;;  %v427_v61 = vld [vmem:[#allocation7 + $0x78] sm:$0xff] }
  0x7a   :  { %1042 = vmatprep.subr.bf16.mxu1 %v1041_v39  ;;  %v1061_v59 = vpack.c.bf16 %v425_v58, %v424_v57  ;;  %v1065_v62 = vpack.c.bf16 %v427_v61, %v426_v60 }
  0x7b   :  { %930 = vmatmul.mubr.msk.f32.vlgmr.msra.gmra.mrb[0].mxu0 %vm132_vm0, %v114_v7 }
  0x7c   :  { %932 = vmatprep.mubr.msk.f32.mxu0 %vm132_vm0, %v115_v8 }
  0x7d   :  { %1044 = vmatpush3.bf16.msra.mxu1 %v1041_v39 }
  0x7e   :  { %1046 = vmatprep.subr.bf16.mxu1 %v1045_v45 }
  0x7f   :  { %933 = vmatmul.mubr.msk.f32.gmra.mrb[2].mxu0 %vm132_vm0, %v116_v9 }
  0x80   :  { %935 = vmatprep.mubr.msk.f32.mxu0 %vm132_vm0, %v117_v10 }
  0x81   :  { %1048 = vmatpush3.bf16.msra.mxu1 %v1045_v45 }
  0x82   :  { %1050 = vmatprep.subr.bf16.mxu1 %v1049_v49 }
  0x83   :  { %936 = vmatmul.mubr.msk.f32.gmra.mrb[4].mxu0 %vm132_vm0, %v118_v11 }
  0x84   :  { %938 = vmatprep.mubr.msk.f32.mxu0 %vm132_vm0, %v119_v12 }
  0x85   :  { %1052 = vmatpush3.bf16.msra.mxu1 %v1049_v49  ;;  %v1546_v49 = vld [vmem:[%s1746_s3] ss:$0 sm:$0xff] }
  0x86   :  { %1054 = vmatprep.subr.bf16.mxu1 %v1053_v53 }
  0x87   :  { %939 = vmatmul.mubr.msk.f32.gmra.mrb[6].mxu0 %vm132_vm0, %v120_v13 }
  0x89   :  { %1056 = vmatpush3.bf16.msra.mxu1 %v1053_v53 }
  0x8a   :  { %1058 = vmatprep.subr.bf16.mxu1 %v1057_v56 }
  0x8d   :  { %1060 = vmatpush3.bf16.msra.mxu1 %v1057_v56 }
  0x8e   :  { %1062 = vmatprep.subr.bf16.mxu1 %v1061_v59 }
  0x91   :  { %1064 = vmatpush3.bf16.msra.mxu1 %v1061_v59 }
  0x92   :  { %1066 = vmatprep.subr.bf16.mxu1 %v1065_v62 }
  0x95   :  { %1068 = vmatpush3.bf16.msra.mxu1 %v1065_v62  ;;  %v1554_v62 = vld [vmem:[#allocation5] ss:$0 sm:$0xff] }
 0x14e   :  { %v931_v15 = vpop.f32.mrb[0].mxu0 }
 0x14f   :  { %v1488_v16 = vadd.f32 %v931_v15, %v846_v14  ;;  %v223_v17 = vpop.f32.mrb[1].mxu0 }
 0x150   :  { %v1490_v18 = vadd.f32 %v846_v14, %v223_v17 }
 0x151   :  { %264 = vadd.xlane.f32.xlu0 %v1488_v16  ;;  %v279_v19 = vmul.f32 %v1488_v16, %v1488_v16 }
 0x152   :  { %v934_v20 = vpop.f32.mrb[2].mxu0  ;;  %v278_v23 = vmul.f32 %v1490_v18, %v1490_v18 }
 0x153   :  { %288 = vadd.xlane.f32.xlu1 %v279_v19  ;;  %v233_v21 = vpop.f32.mrb[3].mxu0  ;;  %v1500_v25 = vadd.f32 %v934_v20, %v846_v14 }
 0x154   :  { %v1496_v22 = vadd.f32 %v846_v14, %v233_v21 }
 0x155   :  { %262 = vadd.xlane.f32.xlu0 %v1490_v18  ;;  %v281_v31 = vmul.f32 %v1500_v25, %v1500_v25 }
 0x156   :  { %v937_v24 = vpop.f32.mrb[4].mxu0  ;;  %v280_v27 = vmul.f32 %v1496_v22, %v1496_v22 }
 0x157   :  { %286 = vadd.xlane.f32.xlu1 %v278_v23  ;;  %v243_v26 = vpop.f32.mrb[5].mxu0  ;;  %v1510_v34 = vadd.f32 %v937_v24, %v846_v14 }
 0x158   :  { %v1506_v30 = vadd.f32 %v846_v14, %v243_v26 }
 0x159   :  { %266 = vadd.xlane.f32.xlu0 %v1496_v22  ;;  %v283_v41 = vmul.f32 %v1510_v34, %v1510_v34 }
 0x15a   :  { %v940_v28 = vpop.f32.mrb[6].mxu0  ;;  %v282_v36 = vmul.f32 %v1506_v30, %v1506_v30 }
 0x15b   :  { %268 = vadd.xlane.f32.xlu1 %v1500_v25  ;;  %v253_v29 = vpop.f32.mrb[7].mxu0  ;;  %v1520_v42 = vadd.f32 %v940_v28, %v846_v14 }
 0x15c   :  { %v1516_v40 = vadd.f32 %v846_v14, %v253_v29 }
 0x15d   :  { %290 = vadd.xlane.f32.xlu0 %v280_v27  ;;  %v285_v50 = vmul.f32 %v1520_v42, %v1520_v42 }
 0x15e   :  { %v284_v46 = vmul.f32 %v1516_v40, %v1516_v40 }
 0x15f   :  { %292 = vadd.xlane.f32.xlu1 %v281_v31 }
 0x161   :  { %270 = vadd.xlane.f32.xlu0 %v1506_v30 }
 0x163   :  { %272 = vadd.xlane.f32.xlu1 %v1510_v34 }
 0x165   :  { %294 = vadd.xlane.f32.xlu0 %v282_v36 }
 0x167   :  { %296 = vadd.xlane.f32.xlu1 %v283_v41 }
 0x169   :  { %274 = vadd.xlane.f32.xlu0 %v1516_v40 }
 0x16b   :  { %276 = vadd.xlane.f32.xlu1 %v1520_v42 }
 0x16d   :  { %298 = vadd.xlane.f32.xlu0 %v284_v46 }
 0x16f   :  { %300 = vadd.xlane.f32.xlu1 %v285_v50 }
 0x1de   :  { %v265_v63 = vpop.xlane.xlu0 %264 }
 0x1df   :  { %v303_v0 = vmul.f32 0.015625, %v265_v63 }
 0x1e0   :  { %v289_v1 = vpop.xlane.xlu1 %288 }
 0x1e1   :  { %v319_v2 = vmul.f32 %v303_v0, %v303_v0  ;;  %v311_v3 = vmul.f32 0.015625, %v289_v1  ;;  %v343_v41 = vsub.f32 %v1488_v16, %v303_v0 }
 0x1e2   :  { %v263_v4 = vpop.xlane.xlu0 %262 }
 0x1e3   :  { %v327_v5 = vsub.f32 %v311_v3, %v319_v2  ;;  %v302_v6 = vmul.f32 0.015625, %v263_v4 }
 0x1e4   :  { %v287_v7 = vpop.xlane.xlu1 %286 }
 0x1e5   :  { %v335_v8 = vmax.f32 %v327_v5, 0.0  ;;  %v318_v9 = vmul.f32 %v302_v6, %v302_v6  ;;  %v310_v10 = vmul.f32 0.015625, %v287_v7  ;;  %v342_v53 = vsub.f32 %v1490_v18, %v302_v6 }
 0x1e6   :  { %v267_v11 = vpop.xlane.xlu0 %266 }
 0x1e7   :  { %v351_v12 = vadd.f32 1e-05, %v335_v8  ;;  %v326_v13 = vsub.f32 %v310_v10, %v318_v9  ;;  %v1528_v14 = vmul.f32 0.015625, %v267_v11 }
 0x1e8   :  { %v269_v15 = vpop.xlane.xlu1 %268 }
 0x1e9   :  { %1110 = vrsqrt.f32 %v351_v12  ;;  %v334_v17 = vmax.f32 %v326_v13, 0.0  ;;  %v320_v19 = vmul.f32 %v1528_v14, %v1528_v14  ;;  %v1532_v20 = vmul.f32 0.015625, %v269_v15 }
 0x1ea   :  { %v291_v21 = vpop.xlane.xlu0 %290  ;;  %v344_v7 = vsub.f32 %v1496_v22, %v1528_v14 }
 0x1eb   :  { %v350_v23 = vadd.f32 1e-05, %v334_v17  ;;  %v312_v24 = vmul.f32 0.015625, %v291_v21  ;;  %v321_v27 = vmul.f32 %v1532_v20, %v1532_v20  ;;  %v345_v15 = vsub.f32 %v1500_v25, %v1532_v20 }
 0x1ec   :  { %v293_v26 = vpop.xlane.xlu1 %292 }
 0x1ed   :  { %1112 = vrsqrt.f32 %v350_v23  ;;  %v328_v28 = vsub.f32 %v312_v24, %v320_v19  ;;  %v313_v29 = vmul.f32 0.015625, %v293_v26 }
 0x1ee   :  { %v271_v31 = vpop.xlane.xlu0 %270 }
 0x1ef   :  { %v336_v32 = vmax.f32 %v328_v28, 0.0  ;;  %v329_v33 = vsub.f32 %v313_v29, %v321_v27  ;;  %v1536_v35 = vmul.f32 0.015625, %v271_v31 }
 0x1f0   :  { %v273_v36 = vpop.xlane.xlu1 %272 }
 0x1f1   :  { %v352_v37 = vadd.f32 1e-05, %v336_v32  ;;  %v337_v38 = vmax.f32 %v329_v33, 0.0  ;;  %v322_v39 = vmul.f32 %v1536_v35, %v1536_v35  ;;  %v1541_v43 = vmul.f32 0.015625, %v273_v36 }
 0x1f2   :  { %v295_v44 = vpop.xlane.xlu0 %294  ;;  %v346_v25 = vsub.f32 %v1506_v30, %v1536_v35 }
 0x1f3   :  { %v1111_v45 = vpop.eup %1110  ;;  %1114 = vrsqrt.f32 %v352_v37  ;;  %v353_v46 = vadd.f32 1e-05, %v337_v38  ;;  %v314_v47 = vmul.f32 0.015625, %v295_v44  ;;  %v323_v51 = vmul.f32 %v1541_v43, %v1541_v43 }
 0x1f4   :  { %v297_v48 = vpop.xlane.xlu1 %296  ;;  %v367_v50 = vmul.f32 %v1111_v45, %v343_v41  ;;  %v347_v37 = vsub.f32 %v1510_v34, %v1541_v43 }
 0x1f5   :  { %1116 = vrsqrt.f32 %v353_v46  ;;  %v330_v52 = vsub.f32 %v314_v47, %v322_v39  ;;  %v315_v16 = vmul.f32 0.015625, %v297_v48 }
 0x1f6   :  { %v275_v54 = vpop.xlane.xlu0 %274  ;;  %v382_v59 = vmul.f32 %v1546_v49, %v367_v50 }
 0x1f7   :  { %v1113_v55 = vpop.eup %1112  ;;  %v338_v56 = vmax.f32 %v330_v52, 0.0  ;;  %v331_v57 = vsub.f32 %v315_v16, %v323_v51  ;;  %v1551_v58 = vmul.f32 0.015625, %v275_v54 }
 0x1f8   :  { %v277_v60 = vpop.xlane.xlu1 %276  ;;  %v366_v61 = vmul.f32 %v1113_v55, %v342_v53  ;;  %v397_v6 = vadd.f32 %v1554_v62, %v382_v59 }
 0x1f9   :  { %v354_v63 = vadd.f32 1e-05, %v338_v56  ;;  %v339_v0 = vmax.f32 %v331_v57, 0.0  ;;  %v324_v1 = vmul.f32 %v1551_v58, %v1551_v58  ;;  %v309_v2 = vmul.f32 0.015625, %v277_v60 }
 0x1fa   :  { %v299_v3 = vpop.xlane.xlu0 %298  ;;  %v381_v18 = vmul.f32 %v1546_v49, %v366_v61  ;;  %v405_v26 = vmax.f32 %v397_v6, 0.0  ;;  %v348_v35 = vsub.f32 %v1516_v40, %v1551_v58  ;;  %v857_v58 = vld [vmem:[#allocation8] ss:$0 sm:$0xff] }
 0x1fb   :  { %1118 = vrsqrt.f32 %v354_v63  ;;  %v355_v4 = vadd.f32 1e-05, %v339_v0  ;;  %v316_v5 = vmul.f32 0.015625, %v299_v3  ;;  %v325_v11 = vmul.f32 %v309_v2, %v309_v2 }
 0x1fc   :  { %v301_v8 = vpop.xlane.xlu1 %300  ;;  %v396_v9 = vadd.f32 %v1554_v62, %v381_v18  ;;  %v349_v34 = vsub.f32 %v1520_v42, %v309_v2 }
 0x1fd   :  { %v1115_v10 = vpop.eup %1114  ;;  %1120 = vrsqrt.f32 %v355_v4  ;;  %v332_v12 = vsub.f32 %v316_v5, %v324_v1  ;;  %v317_v13 = vmul.f32 0.015625, %v301_v8  ;;  %v691_v8 = vld [vmem:[%s1752_s9 + $0x8] sm:$0xff] }
 0x1fe   :  { %v404_v17 = vmax.f32 %v396_v9, 0.0  ;;  %v368_v19 = vmul.f32 %v1115_v10, %v344_v7  ;;  %v690_v7 = vld [vmem:[%s1752_s9] sm:$0xff] }
 0x1ff   :  { %v1117_v21 = vpop.eup %1116  ;;  %v340_v23 = vmax.f32 %v332_v12, 0.0  ;;  %v333_v24 = vsub.f32 %v317_v13, %v325_v11  ;;  %v1069_v10 = vpack.c.bf16 %v691_v8, %v690_v7  ;;  %v692_v11 = vld [vmem:[%s1752_s9 + $0x10] sm:$0xff]  ;;  %v693_v12 = vld [vmem:[%s1752_s9 + $0x18] sm:$0xff] }
 0x200   :  { %973 = vmatprep.mubr.f32.mxu1 %v404_v17  ;;  %v383_v22 = vmul.f32 %v1546_v49, %v368_v19  ;;  %v369_v14 = vmul.f32 %v1117_v21, %v345_v15  ;;  %v1073_v15 = vpack.c.bf16 %v693_v12, %v692_v11 }
 0x201   :  { %v356_v27 = vadd.f32 1e-05, %v340_v23  ;;  %v341_v28 = vmax.f32 %v333_v24, 0.0  ;;  %974 = vmatmul.mubr.f32.vlgmr.msra.gmra.mrb[0].mxu1 %v405_v26  ;;  %1070 = vmatprep.subr.bf16.mxu0 %v1069_v10  ;;  %v694_v24 = vld [vmem:[%s1752_s9 + $0x20] sm:$0xff]  ;;  %v695_v26 = vld [vmem:[%s1752_s9 + $0x28] sm:$0xff] }
 0x202   :  { %v398_v29 = vadd.f32 %v1554_v62, %v383_v22  ;;  %v384_v31 = vmul.f32 %v1546_v49, %v369_v14  ;;  %1072 = vmatpush3.bf16.msra.mxu0 %v1069_v10  ;;  %v1077_v14 = vpack.c.bf16 %v695_v26, %v694_v24 }
 0x203   :  { %1122 = vrsqrt.f32 %v356_v27  ;;  %v357_v32 = vadd.f32 1e-05, %v341_v28  ;;  %1074 = vmatprep.subr.bf16.mxu0 %v1073_v15  ;;  %v696_v27 = vld [vmem:[%s1752_s9 + $0x30] sm:$0xff]  ;;  %v697_v28 = vld [vmem:[%s1752_s9 + $0x38] sm:$0xff] }
 0x204   :  { %v406_v20 = vmax.f32 %v398_v29, 0.0  ;;  %v399_v33 = vadd.f32 %v1554_v62, %v384_v31  ;;  %v1081_v31 = vpack.c.bf16 %v697_v28, %v696_v27 }
 0x205   :  { %v1119_v36 = vpop.eup %1118  ;;  %1124 = vrsqrt.f32 %v357_v32 }
 0x206   :  { %976 = vmatprep.mubr.f32.mxu1 %v406_v20  ;;  %v407_v38 = vmax.f32 %v399_v33, 0.0  ;;  %v370_v39 = vmul.f32 %v1119_v36, %v346_v25  ;;  %1076 = vmatpush3.bf16.msra.mxu0 %v1073_v15  ;;  %v698_v25 = vld [vmem:[%s1752_s9 + $0x40] sm:$0xff]  ;;  %v699_v20 = vld [vmem:[%s1752_s9 + $0x48] sm:$0xff]  ;;  %v700_v36 = vld [vmem:[%s1752_s9 + $0x50] sm:$0xff] }
 0x207   :  { %v1121_v41 = vpop.eup %1120  ;;  %1078 = vmatprep.subr.bf16.mxu0 %v1077_v14  ;;  %v1085_v33 = vpack.c.bf16 %v699_v20, %v698_v25 }
 0x208   :  { %977 = vmatmul.mubr.f32.gmra.mrb[2].mxu1 %v407_v38  ;;  %v385_v44 = vmul.f32 %v1546_v49, %v370_v39  ;;  %v371_v45 = vmul.f32 %v1121_v41, %v347_v37  ;;  %v701_v37 = vld [vmem:[%s1752_s9 + $0x58] sm:$0xff]  ;;  %v702_v39 = vld [vmem:[%s1752_s9 + $0x60] sm:$0xff]  ;;  %v703_v41 = vld [vmem:[%s1752_s9 + $0x68] sm:$0xff] }
 0x209   :  { %v1089_v38 = vpack.c.bf16 %v701_v37, %v700_v36 }
 0x20a   :  { %v400_v46 = vadd.f32 %v1554_v62, %v385_v44  ;;  %v386_v30 = vmul.f32 %v1546_v49, %v371_v45  ;;  %1080 = vmatpush3.bf16.msra.mxu0 %v1077_v14  ;;  %v1093_v44 = vpack.c.bf16 %v703_v41, %v702_v39  ;;  %v704_v45 = vld [vmem:[%s1752_s9 + $0x70] sm:$0xff] }
 0x20b   :  { %1082 = vmatprep.subr.bf16.mxu0 %v1081_v31 }
 0x20c   :  { %v408_v47 = vmax.f32 %v400_v46, 0.0  ;;  %v401_v48 = vadd.f32 %v1554_v62, %v386_v30  ;;  %v705_v46 = vld [vmem:[%s1752_s9 + $0x78] sm:$0xff] }
 0x20d   :  { %v1123_v50 = vpop.eup %1122  ;;  %v1097_v30 = vpack.c.bf16 %v705_v46, %v704_v45  ;;  %v1694_v46 = vld [vmem:[#allocation11] ss:$0 sm:$0xff] }
 0x20e   :  { %979 = vmatprep.mubr.f32.mxu1 %v408_v47  ;;  %v409_v43 = vmax.f32 %v401_v48, 0.0  ;;  %v372_v51 = vmul.f32 %v1123_v50, %v348_v35  ;;  %1084 = vmatpush3.bf16.msra.mxu0 %v1081_v31 }
 0x20f   :  { %v1125_v52 = vpop.eup %1124  ;;  %1086 = vmatprep.subr.bf16.mxu0 %v1085_v33 }
 0x210   :  { %980 = vmatmul.mubr.f32.gmra.mrb[4].mxu1 %v409_v43  ;;  %v387_v16 = vmul.f32 %v1546_v49, %v372_v51  ;;  %v373_v53 = vmul.f32 %v1125_v52, %v349_v34 }
 0x212   :  { %v402_v54 = vadd.f32 %v1554_v62, %v387_v16  ;;  %v388_v55 = vmul.f32 %v1546_v49, %v373_v53  ;;  %1088 = vmatpush3.bf16.msra.mxu0 %v1085_v33  ;;  %v1690_v33 = vld [vmem:[#allocation10] ss:$0 sm:$0xff] }
 0x213   :  { %1090 = vmatprep.subr.bf16.mxu0 %v1089_v38 }
 0x214   :  { %v410_v56 = vmax.f32 %v402_v54, 0.0  ;;  %v403_v40 = vadd.f32 %v1554_v62, %v388_v55 }
 0x216   :  { %982 = vmatprep.mubr.f32.mxu1 %v410_v56  ;;  %v411_v57 = vmax.f32 %v403_v40, 0.0  ;;  %1092 = vmatpush3.bf16.msra.mxu0 %v1089_v38 }
 0x217   :  { %1094 = vmatprep.subr.bf16.mxu0 %v1093_v44 }
 0x218   :  { %983 = vmatmul.mubr.f32.gmra.mrb[6].mxu1 %v411_v57 }
 0x21a   :  { %1096 = vmatpush3.bf16.msra.mxu0 %v1093_v44 }
 0x21b   :  { %1098 = vmatprep.subr.bf16.mxu0 %v1097_v30 }
 0x21e   :  { %1100 = vmatpush3.bf16.msra.mxu0 %v1097_v30 }
 0x2d4   :  { %v975_v42 = vpop.f32.mrb[0].mxu1 }
 0x2d5   :  { %v1584_v59 = vadd.f32 %v975_v42, %v857_v58  ;;  %v501_v60 = vpop.f32.mrb[1].mxu1 }
 0x2d6   :  { %v1586_v61 = vadd.f32 %v857_v58, %v501_v60 }
 0x2d7   :  { %542 = vadd.xlane.f32.xlu1 %v1584_v59  ;;  %v557_v49 = vmul.f32 %v1584_v59, %v1584_v59 }
 0x2d8   :  { %540 = vadd.xlane.f32.xlu0 %v1586_v61  ;;  %v556_v62 = vmul.f32 %v1586_v61, %v1586_v61 }
 0x2db   :  { %566 = vadd.xlane.f32.xlu1 %v557_v49  ;;  %v978_v63 = vpop.f32.mrb[2].mxu1 }
 0x2dc   :  { %v1594_v0 = vadd.f32 %v978_v63, %v857_v58  ;;  %564 = vadd.xlane.f32.xlu0 %v556_v62  ;;  %v511_v1 = vpop.f32.mrb[3].mxu1 }
 0x2dd   :  { %v1596_v2 = vadd.f32 %v857_v58, %v511_v1 }
 0x2de   :  { %v559_v3 = vmul.f32 %v1594_v0, %v1594_v0 }
 0x2df   :  { %546 = vadd.xlane.f32.xlu1 %v1594_v0  ;;  %v558_v18 = vmul.f32 %v1596_v2, %v1596_v2 }
 0x2e0   :  { %544 = vadd.xlane.f32.xlu0 %v1596_v2 }
 0x2e3   :  { %570 = vadd.xlane.f32.xlu1 %v559_v3  ;;  %v981_v4 = vpop.f32.mrb[4].mxu1 }
 0x2e4   :  { %v1604_v5 = vadd.f32 %v981_v4, %v857_v58  ;;  %568 = vadd.xlane.f32.xlu0 %v558_v18  ;;  %v521_v6 = vpop.f32.mrb[5].mxu1 }
 0x2e5   :  { %v1612_v9 = vadd.f32 %v857_v58, %v521_v6 }
 0x2e6   :  { %v561_v13 = vmul.f32 %v1604_v5, %v1604_v5 }
 0x2e7   :  { %550 = vadd.xlane.f32.xlu1 %v1604_v5  ;;  %v560_v17 = vmul.f32 %v1612_v9, %v1612_v9 }
 0x2e8   :  { %548 = vadd.xlane.f32.xlu0 %v1612_v9 }
 0x2eb   :  { %574 = vadd.xlane.f32.xlu1 %v561_v13  ;;  %v984_v19 = vpop.f32.mrb[6].mxu1 }
 0x2ec   :  { %v1626_v21 = vadd.f32 %v984_v19, %v857_v58  ;;  %572 = vadd.xlane.f32.xlu0 %v560_v17  ;;  %v531_v23 = vpop.f32.mrb[7].mxu1 }
 0x2ed   :  { %v1634_v22 = vadd.f32 %v857_v58, %v531_v23 }
 0x2ee   :  { %v563_v29 = vmul.f32 %v1626_v21, %v1626_v21 }
 0x2ef   :  { %554 = vadd.xlane.f32.xlu1 %v1626_v21  ;;  %v562_v32 = vmul.f32 %v1634_v22, %v1634_v22 }
 0x2f0   :  { %552 = vadd.xlane.f32.xlu0 %v1634_v22 }
 0x2f3   :  { %578 = vadd.xlane.f32.xlu1 %v563_v29 }
 0x2f4   :  { %576 = vadd.xlane.f32.xlu0 %v562_v32 }
 0x364   :  { %v543_v35 = vpop.xlane.xlu1 %542 }
 0x365   :  { %v581_v47 = vmul.f32 0.0078125, %v543_v35  ;;  %v541_v48 = vpop.xlane.xlu0 %540 }
 0x366   :  { %v580_v50 = vmul.f32 0.0078125, %v541_v48 }
 0x367   :  { %v597_v43 = vmul.f32 %v581_v47, %v581_v47  ;;  %v621_v28 = vsub.f32 %v1584_v59, %v581_v47 }
 0x368   :  { %v567_v34 = vpop.xlane.xlu1 %566  ;;  %v596_v16 = vmul.f32 %v580_v50, %v580_v50  ;;  %v620_v25 = vsub.f32 %v1586_v61, %v580_v50 }
 0x369   :  { %v589_v51 = vmul.f32 0.0078125, %v567_v34  ;;  %v565_v52 = vpop.xlane.xlu0 %564 }
 0x36a   :  { %v588_v53 = vmul.f32 0.0078125, %v565_v52 }
 0x36b   :  { %v605_v54 = vsub.f32 %v589_v51, %v597_v43 }
 0x36c   :  { %v604_v55 = vsub.f32 %v588_v53, %v596_v16  ;;  %v547_v56 = vpop.xlane.xlu1 %546 }
 0x36d   :  { %v613_v40 = vmax.f32 %v605_v54, 0.0  ;;  %v1672_v57 = vmul.f32 0.0078125, %v547_v56  ;;  %v545_v58 = vpop.xlane.xlu0 %544 }
 0x36e   :  { %v612_v42 = vmax.f32 %v604_v55, 0.0  ;;  %v1674_v60 = vmul.f32 0.0078125, %v545_v58 }
 0x36f   :  { %v629_v49 = vadd.f32 1e-05, %v613_v40  ;;  %v599_v1 = vmul.f32 %v1672_v57, %v1672_v57  ;;  %v623_v54 = vsub.f32 %v1594_v0, %v1672_v57 }
 0x370   :  { %v628_v62 = vadd.f32 1e-05, %v612_v42  ;;  %v571_v63 = vpop.xlane.xlu1 %570  ;;  %v598_v4 = vmul.f32 %v1674_v60, %v1674_v60  ;;  %v622_v58 = vsub.f32 %v1596_v2, %v1674_v60 }
 0x371   :  { %1126 = vrsqrt.f32 %v629_v49  ;;  %v591_v3 = vmul.f32 0.0078125, %v571_v63  ;;  %v569_v18 = vpop.xlane.xlu0 %568 }
 0x372   :  { %1128 = vrsqrt.f32 %v628_v62  ;;  %v590_v6 = vmul.f32 0.0078125, %v569_v18 }
 0x373   :  { %v607_v7 = vsub.f32 %v591_v3, %v599_v1 }
 0x374   :  { %v606_v8 = vsub.f32 %v590_v6, %v598_v4  ;;  %v551_v10 = vpop.xlane.xlu1 %550 }
 0x375   :  { %v615_v11 = vmax.f32 %v607_v7, 0.0  ;;  %v1680_v12 = vmul.f32 0.0078125, %v551_v10  ;;  %v549_v13 = vpop.xlane.xlu0 %548 }
 0x376   :  { %v614_v15 = vmax.f32 %v606_v8, 0.0  ;;  %v1682_v17 = vmul.f32 0.0078125, %v549_v13 }
 0x377   :  { %v631_v19 = vadd.f32 1e-05, %v615_v11  ;;  %v601_v26 = vmul.f32 %v1680_v12, %v1680_v12  ;;  %v625_v60 = vsub.f32 %v1604_v5, %v1680_v12 }
 0x378   :  { %v630_v23 = vadd.f32 1e-05, %v614_v15  ;;  %v575_v24 = vpop.xlane.xlu1 %574  ;;  %v600_v29 = vmul.f32 %v1682_v17, %v1682_v17  ;;  %v624_v13 = vsub.f32 %v1612_v9, %v1682_v17 }
 0x379   :  { %1130 = vrsqrt.f32 %v631_v19  ;;  %v593_v14 = vmul.f32 0.0078125, %v575_v24  ;;  %v573_v27 = vpop.xlane.xlu0 %572 }
 0x37a   :  { %1132 = vrsqrt.f32 %v630_v23  ;;  %v592_v31 = vmul.f32 0.0078125, %v573_v27 }
 0x37b   :  { %v1127_v32 = vpop.eup %1126  ;;  %v609_v20 = vsub.f32 %v593_v14, %v601_v26 }
 0x37c   :  { %v1129_v36 = vpop.eup %1128  ;;  %v645_v37 = vmul.f32 %v1127_v32, %v621_v28  ;;  %v608_v38 = vsub.f32 %v592_v31, %v600_v29  ;;  %v555_v39 = vpop.xlane.xlu1 %554 }
 0x37d   :  { %v617_v41 = vmax.f32 %v609_v20, 0.0  ;;  %v1692_v44 = vmul.f32 0.0078125, %v555_v39  ;;  %v553_v45 = vpop.xlane.xlu0 %552  ;;  %v644_v59 = vmul.f32 %v1129_v36, %v620_v25 }
 0x37e   :  { %v616_v30 = vmax.f32 %v608_v38, 0.0  ;;  %v586_v35 = vmul.f32 0.0078125, %v553_v45  ;;  %v660_v47 = vmul.f32 %v1690_v33, %v645_v37 }
 0x37f   :  { %v633_v48 = vadd.f32 1e-05, %v617_v41  ;;  %v659_v61 = vmul.f32 %v1690_v33, %v644_v59  ;;  %v603_v51 = vmul.f32 %v1692_v44, %v1692_v44  ;;  %v627_v12 = vsub.f32 %v1626_v21, %v1692_v44 }
 0x380   :  { %v632_v50 = vadd.f32 1e-05, %v616_v30  ;;  %v579_v34 = vpop.xlane.xlu1 %578  ;;  %v675_v43 = vadd.f32 %v1694_v46, %v660_v47  ;;  %v602_v55 = vmul.f32 %v586_v35, %v586_v35  ;;  %v626_v9 = vsub.f32 %v1634_v22, %v586_v35  ;;  %v860_v22 = vld [vmem:[%s1753_s10] ss:$0 sm:$0xff]  ;;  %s831_s10 = sshll.u32 %s1314_s14, 4  ;;  %s832_s10 = int_to_ptr.vmem [resolvable:$true] %s831_s10 }
 0x381   :  { %1134 = vrsqrt.f32 %v633_v48  ;;  %v595_v52 = vmul.f32 0.0078125, %v579_v34  ;;  %v577_v16 = vpop.xlane.xlu0 %576  ;;  %v674_v53 = vadd.f32 %v1694_v46, %v659_v61  ;;  %s1274_s8 = scalar_lea.vmem %s832_s10, 1024  ;;  %p1279_p7 = scmp.lt.s32.totalorder %s832_s10, %s832_s10 }
 0x382   :  { %1136 = vrsqrt.f32 %v632_v50  ;;  %v594_v56 = vmul.f32 0.0078125, %v577_v16  ;;  %v683_v1 = vmax.f32 %v675_v43, 0.0  ;;  %p1275_p6 = scmp.ne.s32.totalorder %s832_s10, %s1274_s8  ;;  %p1280_p8 = scmp.lt.s32.totalorder %s1274_s8, %s1274_s8 }
 0x383   :  { %v1131_v40 = vpop.eup %1130  ;;  %v611_v42 = vsub.f32 %v595_v52, %v603_v51  ;;  %v682_v49 = vmax.f32 %v674_v53, 0.0 }
 0x384   :  { %v1133_v62 = vpop.eup %1132  ;;  %v610_v63 = vsub.f32 %v594_v56, %v602_v55  ;;  %v647_v3 = vmul.f32 %v1131_v40, %v623_v54  ;;  %p1281_p9 = por %p1280_p8, %p1279_p7 }
 0x385   :  { %v619_v18 = vmax.f32 %v611_v42, 0.0  ;;  %1017 = vmatprep.mubr.f32.mxu0 %v682_v49  ;;  %v646_v4 = vmul.f32 %v1133_v62, %v622_v58 }
 0x386   :  { %v618_v6 = vmax.f32 %v610_v63, 0.0  ;;  %1018 = vmatmul.mubr.f32.vlgmr.msra.gmra.mrb[8].mxu0 %v683_v1  ;;  %v662_v0 = vmul.f32 %v1690_v33, %v647_v3  ;;  %p1282_p10 = pnand %p1281_p9, %p1275_p6 }
 0x387   :  { %v635_v57 = vadd.f32 1e-05, %v619_v18  ;;  %v661_v7 = vmul.f32 %v1690_v33, %v646_v4 }
 0x388   :  { %v634_v8 = vadd.f32 1e-05, %v618_v6  ;;  %v677_v10 = vadd.f32 %v1694_v46, %v662_v0 }
 0x389   :  { %1138 = vrsqrt.f32 %v635_v57  ;;  %v676_v2 = vadd.f32 %v1694_v46, %v661_v7 }
 0x38a   :  { %1140 = vrsqrt.f32 %v634_v8  ;;  %v685_v23 = vmax.f32 %v677_v10, 0.0 }
 0x38b   :  { %v1135_v11 = vpop.eup %1134  ;;  %v684_v15 = vmax.f32 %v676_v2, 0.0 }
 0x38c   :  { %v1137_v19 = vpop.eup %1136  ;;  %v649_v24 = vmul.f32 %v1135_v11, %v625_v60 }
 0x38d   :  { %1020 = vmatprep.mubr.f32.mxu0 %v684_v15  ;;  %v648_v26 = vmul.f32 %v1137_v19, %v624_v13 }
 0x38e   :  { %1021 = vmatmul.mubr.f32.gmra.mrb[10].mxu0 %v685_v23  ;;  %v664_v14 = vmul.f32 %v1690_v33, %v649_v24 }
 0x38f   :  { %v663_v27 = vmul.f32 %v1690_v33, %v648_v26 }
 0x390   :  { %v679_v28 = vadd.f32 %v1694_v46, %v664_v14 }
 0x391   :  { %v678_v5 = vadd.f32 %v1694_v46, %v663_v27 }
 0x392   :  { %v687_v32 = vmax.f32 %v679_v28, 0.0 }
 0x393   :  { %v1139_v29 = vpop.eup %1138  ;;  %v686_v17 = vmax.f32 %v678_v5, 0.0 }
 0x394   :  { %v1141_v31 = vpop.eup %1140  ;;  %v651_v25 = vmul.f32 %v1139_v29, %v627_v12 }
 0x395   :  { %1023 = vmatprep.mubr.f32.mxu0 %v686_v17  ;;  %v650_v20 = vmul.f32 %v1141_v31, %v626_v9 }
 0x396   :  { %1024 = vmatmul.mubr.f32.gmra.mrb[12].mxu0 %v687_v32  ;;  %v666_v36 = vmul.f32 %v1690_v33, %v651_v25 }
 0x397   :  { %v665_v37 = vmul.f32 %v1690_v33, %v650_v20 }
 0x398   :  { %v681_v38 = vadd.f32 %v1694_v46, %v666_v36 }
 0x399   :  { %v680_v39 = vadd.f32 %v1694_v46, %v665_v37 }
 0x39a   :  { %v689_v21 = vmax.f32 %v681_v38, 0.0 }
 0x39b   :  { %v688_v41 = vmax.f32 %v680_v39, 0.0 }
 0x39d   :  { %1026 = vmatprep.mubr.f32.mxu0 %v688_v41 }
 0x39e   :  { %1027 = vmatmul.mubr.f32.gmra.mrb[14].mxu0 %v689_v21 }
 0x459   :  { %v1019_v44 = vpop.f32.mrb[8].mxu0 }
 0x45a   :  { %v785_v45 = vadd.f32 %v1019_v44, %v860_v22  ;;  %v779_v59 = vpop.f32.mrb[9].mxu0 }
 0x45b   :  { %v780_v30 = vadd.f32 %v860_v22, %v779_v59 }
 0x45c   :  { %819 = vst [vmem:[#allocation13 + $0x8] sm:$0xff] %v785_v45 }
 0x45d   :  { %818 = vst [vmem:[#allocation13] sm:$0xff] %v780_v30 }
 0x461   :  { %v1022_v35 = vpop.f32.mrb[10].mxu0 }
 0x462   :  { %v795_v33 = vadd.f32 %v1022_v35, %v860_v22  ;;  %v789_v47 = vpop.f32.mrb[11].mxu0 }
 0x463   :  { %v790_v48 = vadd.f32 %v860_v22, %v789_v47 }
 0x464   :  { %821 = vst [vmem:[#allocation13 + $0x18] sm:$0xff] %v795_v33 }
 0x465   :  { %820 = vst [vmem:[#allocation13 + $0x10] sm:$0xff] %v790_v48 }
 0x469   :  { %v1025_v46 = vpop.f32.mrb[12].mxu0 }
 0x46a   :  { %v805_v61 = vadd.f32 %v1025_v46, %v860_v22  ;;  %v799_v50 = vpop.f32.mrb[13].mxu0 }
 0x46b   :  { %v800_v34 = vadd.f32 %v860_v22, %v799_v50 }
 0x46c   :  { %823 = vst [vmem:[#allocation13 + $0x28] sm:$0xff] %v805_v61 }
 0x46d   :  { %822 = vst [vmem:[#allocation13 + $0x20] sm:$0xff] %v800_v34 }
 0x471   :  { %v1028_v43 = vpop.f32.mrb[14].mxu0 }
 0x472   :  { %v815_v51 = vadd.f32 %v1028_v43, %v860_v22  ;;  %v809_v52 = vpop.f32.mrb[15].mxu0 }
 0x473   :  { %v810_v16 = vadd.f32 %v860_v22, %v809_v52 }
 0x474   :  { %825 = vst [vmem:[#allocation13 + $0x38] sm:$0xff] %v815_v51 }
 0x475   :  { %824 = vst [vmem:[#allocation13 + $0x30] sm:$0xff] %v810_v16 }
 0x476   :  { %1285 = shalt.err (!%p1282_p10)
}
 0x477   :  { %s1286_s17 = scalar_lea.hbm %s1754_s11, 1024 }
 0x478   :  { %p1287_p11 = scmp.ne.s32.totalorder %s1754_s11, %s1286_s17  ;;  %p1290_p12 = scmp.lt.u32.totalorder %s1286_s17, %s1754_s11 }
 0x47a   :  { %p1292_p13 = pnand %p1290_p12, %p1287_p11 }
 0x47c   :  { %1295 = shalt.err (!%p1292_p13)
}
 0x47d   :  { %837 = dma.vmem_to_hbm [thread:$0]  %s832_s10, 1024, %s1754_s11, [#allocation4], %s1309_s6, %s1309_s6, %s1310_s20  }
 0x47e   :  { %1304 = dma.done.wait [#allocation4], 1024  }
 0x47f   :  { %1305 = vsyncadd [#allocation4], 4294966272 }
 0x480   :  { %841 = vsyncpa [#allocation3], 1 }
 0x481   :  { %842 = vsyncpa [#allocation6], 1 }
 0x482   :  { %843 = vsyncpa [#allocation9], 1 }
 0x483   :  { %844 = vsyncpa [#allocation12], 1 }
 0x484   :  { %845 = vsyncpa [#allocation4], 1 }

</bundles_post_ra>
